<compile_context>
chip_gen: v7x
topology: tpu7x:2x2x1
jax: 0.10.0
libtpu: 0.0.40
codegen_flags: <defaults>
</compile_context>

<pallas_src>
import functools

import jax
import jax.numpy as jnp
import numpy as np
from jax.experimental import pallas as pl
from jax.experimental.pallas import tpu as pltpu


# ----------------------------------------------------------------------------
# Kernel (single grid step):
#   pooled[b, c] = pool_{t,h,w} x[b, c, t, h, w]                  (max / avg)
#   att[b]       = W2 @ relu(W1 @ pooled[b] + b1) + b2   (summed over pools)
#   out[b]       = x[b] * sigmoid(att[b]) + x[b]
# ----------------------------------------------------------------------------
def _channel_gate_kernel(x_ref, p_ref, o_ref, *, pool_types, cr, inv_s):
    x = x_ref[...]                               # (B, C, S) f32, lane-dense
    p = p_ref[...]                               # (C, 3*Cr + C) packed params
    C = p.shape[0]

    # Static slices of the single packed parameter tile.
    w1 = p[:, :cr]                               # (C, Cr)   == Linear1.weight.T
    w2t = p[:, cr:2 * cr]                        # (C, Cr)   == Linear2.weight.T.T
    b1 = p[0:1, 2 * cr:3 * cr]                   # (1, Cr)
    b2 = p[0:1, 3 * cr:3 * cr + C]               # (1, C)

    # One pass over x produces whichever pools are needed (hoisted out of loop).
    x_max = jnp.max(x, axis=-1) if "max" in pool_types else None        # (B, C)
    x_avg = (jnp.sum(x, axis=-1) * inv_s) if "avg" in pool_types else None

    att_sum = None
    for pt in pool_types:
        if pt == "max":
            pooled = x_max
        elif pt == "avg":
            pooled = x_avg
        else:
            # TODO(synk): 'lp' pooling (F.lp_pool3d) not implemented.
            raise NotImplementedError(f"pool type {pt!r} not supported")

        # Tiny MLP on the (B, C) pooled vectors: VPU broadcasts + XLU axis
        # reductions only (avoids degenerate M=B MXU matmuls and transposes).
        # h1[b, j] = relu( sum_c w1[c, j] * pooled[b, c] + b1[j] )   -> (B, Cr)
        h1 = jnp.sum(w1[None, :, :] * pooled[:, :, None], axis=1) + b1
        h1 = jnp.maximum(h1, 0.0)
        # att[b, c] = sum_j w2t[c, j] * h1[b, j] + b2[c]             -> (B, C)
        att = jnp.sum(w2t[None, :, :] * h1[:, None, :], axis=2) + b2
        att_sum = att if att_sum is None else att_sum + att

    gate = 1.0 + jax.nn.sigmoid(att_sum)                              # (B, C)
    # out = x * sigmoid(att) + x, gate broadcast along the lane (spatial) axis.
    o_ref[...] = (x * gate[:, :, None]).astype(o_ref.dtype)


# ----------------------------------------------------------------------------
# Wrapper
# ----------------------------------------------------------------------------
def channel_gate(x, w1, b1, w2, b2, pool_types=("max",)):
    """ChannelGate forward.

    x  : (B, C, T, H, W)  float32, PyTorch NCDHW layout
    w1 : (C, C//r)   == PyTorch Linear(C, C//r).weight.T
    b1 : (C//r,)
    w2 : (C//r, C)   == PyTorch Linear(C//r, C).weight.T
    b2 : (C,)
    """
    B, C, T, H, W = x.shape
    S = T * H * W
    Cr = w1.shape[1]

    # Free trailing-dim collapse: (B, C, T, H, W) -> (B, C, S). S=256 here, so
    # the (B, C, S) block is lane-dense (last dim a multiple of 128).
    x2 = x.reshape(B, C, S)

    # Pack all four tiny parameter arrays into ONE (C, 3*Cr + C) f32 array so
    # the kernel issues a single parameter DMA (instead of four sub-vreg DMAs,
    # each with its own descriptor cost and 128-lane-padded double buffer).
    L = 3 * Cr + C
    packed = jnp.zeros((C, L), jnp.float32)
    packed = packed.at[:, :Cr].set(w1.astype(jnp.float32))
    packed = packed.at[:, Cr:2 * Cr].set(jnp.transpose(w2).astype(jnp.float32))
    packed = packed.at[0, 2 * Cr:3 * Cr].set(b1.astype(jnp.float32))
    packed = packed.at[0, 3 * Cr:3 * Cr + C].set(b2.astype(jnp.float32))

    kernel = functools.partial(_channel_gate_kernel,
                               pool_types=tuple(pool_types),
                               cr=Cr,
                               inv_s=1.0 / float(S))

    # Single grid step: total payload here is ~64 KiB in + 64 KiB out, so one
    # block / one step minimizes the fixed per-step + pipeline overhead that
    # dominates this kernel. (At large S, split S on an 'arbitrary' axis.)
    out = pl.pallas_call(
        kernel,
        out_shape=jax.ShapeDtypeStruct((B, C, S), x.dtype),
        grid_spec=pltpu.PrefetchScalarGridSpec(
            num_scalar_prefetch=0,
            grid=(1,),
            in_specs=[
                pl.BlockSpec((B, C, S), lambda i: (0, 0, 0)),
                pl.BlockSpec((C, L), lambda i: (0, 0)),
            ],
            out_specs=pl.BlockSpec((B, C, S), lambda i: (0, 0, 0)),
        ),
        # The output is a per-element rescale of the input block (fully loaded
        # to VMEM before the store), so reusing x's HBM buffer is safe.
        input_output_aliases={0: 0},
        compiler_params=pltpu.CompilerParams(
            dimension_semantics=("arbitrary",),
        ),
    )(x2, packed)

    return out.reshape(B, C, T, H, W)


# ----------------------------------------------------------------------------
# Pure-JAX reference (mirrors the PyTorch module) for verification
# ----------------------------------------------------------------------------
def channel_gate_reference(x, w1, b1, w2, b2, pool_types=("max",)):
    B, C, T, H, W = x.shape
    xf = x.reshape(B, C, T * H * W)
    att_sum = None
    for pt in pool_types:
        if pt == "max":
            pooled = jnp.max(xf, axis=-1)                         # (B, C)
        elif pt == "avg":
            pooled = jnp.mean(xf, axis=-1)
        else:
            raise NotImplementedError(pt)
        h = jnp.maximum(pooled @ w1 + b1, 0.0)
        att = h @ w2 + b2
        att_sum = att if att_sum is None else att_sum + att
    scale = jax.nn.sigmoid(att_sum)[:, :, None, None, None]
    return x * scale + x


if __name__ == "__main__":
    key = jax.random.PRNGKey(0)
    kx, k1, k2, k3, k4 = jax.random.split(key, 5)

    # gate_channels = 32, reduction_ratio = 4, pool_types = ['max'] (module
    # defaults); activation shape (B, C, T, H, W) = (2, 32, 4, 8, 8).
    B, C, T, H, W = 2, 32, 4, 8, 8
    RED = 4
    Cr = C // RED

    x = jax.random.normal(kx, (B, C, T, H, W), jnp.float32)
    w1 = jax.random.normal(k1, (C, Cr), jnp.float32) / np.sqrt(C)
    b1 = 0.05 * jax.random.normal(k2, (Cr,), jnp.float32)
    w2 = jax.random.normal(k3, (Cr, C), jnp.float32) / np.sqrt(Cr)
    b2 = 0.05 * jax.random.normal(k4, (C,), jnp.float32)

    # Default pool_types=('max',) — matches the module's default ['max'].
    out = jax.block_until_ready(channel_gate(x, w1, b1, w2, b2))
    assert out.shape == (B, C, T, H, W), out.shape
    ref = jax.block_until_ready(channel_gate_reference(x, w1, b1, w2, b2))
    np.testing.assert_allclose(np.asarray(out), np.asarray(ref),
                               rtol=1e-5, atol=1e-5)

    # Also exercise the multi-pool path ('max', 'avg').
    out2 = jax.block_until_ready(
        channel_gate(x, w1, b1, w2, b2, pool_types=("max", "avg")))
    ref2 = jax.block_until_ready(
        channel_gate_reference(x, w1, b1, w2, b2, pool_types=("max", "avg")))
    np.testing.assert_allclose(np.asarray(out2), np.asarray(ref2),
                               rtol=1e-5, atol=1e-5)

    print("KERNEL_OK")
</pallas_src>

<mosaic_0001>
module attributes {stable_mosaic.version = 11 : i64} {
  func.func @_channel_gate_kernel(%arg0: i32, %arg1: memref<2x32x256xf32, #tpu.memory_space<vmem>>, %arg2: memref<32x56xf32, #tpu.memory_space<vmem>>, %arg3: memref<2x32x256xf32, #tpu.memory_space<vmem>>) attributes {dimension_semantics = [#tpu.dimension_semantics<arbitrary>], iteration_bounds = array<i64: 1>, scalar_prefetch = 0 : i64, scratch_operands = 0 : i64, tpu.core_type = #tpu.core_type<tc>, window_params = [{pipeline_mode = #tpu.pipeline_mode<synchronous>, transform_indices = @transform_0, window_bounds = array<i64: 2, 32, 256>}, {pipeline_mode = #tpu.pipeline_mode<synchronous>, transform_indices = @transform_1, window_bounds = array<i64: 32, 56>}, {pipeline_mode = #tpu.pipeline_mode<synchronous>, transform_indices = @transform_2, window_bounds = array<i64: 2, 32, 256>}]} {
    %c0 = arith.constant 0 : index
    %c0_0 = arith.constant 0 : index
    %c0_1 = arith.constant 0 : index
    %0 = vector.load %arg1[%c0, %c0_0, %c0_1] : memref<2x32x256xf32, #tpu.memory_space<vmem>>, vector<2x32x256xf32>
    %c0_2 = arith.constant 0 : index
    %c0_3 = arith.constant 0 : index
    %1 = vector.load %arg2[%c0_2, %c0_3] : memref<32x56xf32, #tpu.memory_space<vmem>>, vector<32x56xf32>
    %2 = vector.extract_strided_slice %1 {offsets = [0, 0], sizes = [32, 8], strides = [1, 1]} : vector<32x56xf32> to vector<32x8xf32>
    %3 = vector.extract_strided_slice %1 {offsets = [0, 8], sizes = [32, 8], strides = [1, 1]} : vector<32x56xf32> to vector<32x8xf32>
    %4 = vector.extract_strided_slice %1 {offsets = [0, 16], sizes = [1, 8], strides = [1, 1]} : vector<32x56xf32> to vector<1x8xf32>
    %5 = vector.extract_strided_slice %1 {offsets = [0, 24], sizes = [1, 32], strides = [1, 1]} : vector<32x56xf32> to vector<1x32xf32>
    %cst = arith.constant dense<0xFF800000> : vector<2x32xf32>
    %6 = vector.multi_reduction <maximumf>, %0, %cst [2] : vector<2x32x256xf32> to vector<2x32xf32>
    %7 = vector.shape_cast %2 : vector<32x8xf32> to vector<1x32x8xf32>
    %8 = vector.shape_cast %6 : vector<2x32xf32> to vector<2x32x1xf32>
    %9 = vector.broadcast %7 : vector<1x32x8xf32> to vector<2x32x8xf32>
    %10 = vector.broadcast %8 : vector<2x32x1xf32> to vector<2x32x8xf32>
    %11 = arith.mulf %9, %10 : vector<2x32x8xf32>
    %cst_4 = arith.constant dense<0.000000e+00> : vector<2x8xf32>
    %12 = vector.multi_reduction <add>, %11, %cst_4 [1] : vector<2x32x8xf32> to vector<2x8xf32>
    %13 = vector.broadcast %4 : vector<1x8xf32> to vector<2x8xf32>
    %14 = arith.addf %12, %13 : vector<2x8xf32>
    %cst_5 = arith.constant 0.000000e+00 : f32
    %15 = vector.broadcast %cst_5 : f32 to vector<2x8xf32>
    %16 = arith.maximumf %14, %15 : vector<2x8xf32>
    %17 = vector.shape_cast %3 : vector<32x8xf32> to vector<1x32x8xf32>
    %18 = vector.shape_cast %16 : vector<2x8xf32> to vector<2x1x8xf32>
    %19 = vector.broadcast %17 : vector<1x32x8xf32> to vector<2x32x8xf32>
    %20 = vector.broadcast %18 : vector<2x1x8xf32> to vector<2x32x8xf32>
    %21 = arith.mulf %19, %20 : vector<2x32x8xf32>
    %cst_6 = arith.constant dense<0.000000e+00> : vector<2x32xf32>
    %22 = vector.multi_reduction <add>, %21, %cst_6 [2] : vector<2x32x8xf32> to vector<2x32xf32>
    %23 = vector.broadcast %5 : vector<1x32xf32> to vector<2x32xf32>
    %24 = arith.addf %22, %23 : vector<2x32xf32>
    %25 = arith.negf %24 : vector<2x32xf32>
    %26 = math.exp %25 : vector<2x32xf32>
    %cst_7 = arith.constant 1.000000e+00 : f32
    %27 = vector.broadcast %cst_7 : f32 to vector<2x32xf32>
    %28 = arith.addf %27, %26 : vector<2x32xf32>
    %29 = arith.divf %27, %28 : vector<2x32xf32>
    %cst_8 = arith.constant 1.000000e+00 : f32
    %30 = vector.broadcast %cst_8 : f32 to vector<2x32xf32>
    %31 = arith.addf %30, %29 : vector<2x32xf32>
    %32 = vector.shape_cast %31 : vector<2x32xf32> to vector<2x32x1xf32>
    %33 = vector.broadcast %32 : vector<2x32x1xf32> to vector<2x32x256xf32>
    %34 = arith.mulf %0, %33 : vector<2x32x256xf32>
    %c0_9 = arith.constant 0 : index
    %c0_10 = arith.constant 0 : index
    %c0_11 = arith.constant 0 : index
    %35 = vector.load %arg3[%c0_9, %c0_10, %c0_11] : memref<2x32x256xf32, #tpu.memory_space<vmem>>, vector<2x32x256xf32>
    tpu.vector_store %arg3[%c0_9, %c0_10, %c0_11], %34 {strides = array<i32>} : memref<2x32x256xf32, #tpu.memory_space<vmem>>, vector<2x32x256xf32>,
    return
  }
  func.func @transform_0(%arg0: i32) -> (i32, i32, i32) {
    %c0_i32 = arith.constant 0 : i32
    %c0_i32_0 = arith.constant 0 : i32
    %c0_i32_1 = arith.constant 0 : i32
    %c0_i32_2 = arith.constant 0 : i32
    return %c0_i32, %c0_i32_0, %c0_i32_1 : i32, i32, i32
  }
  func.func @transform_1(%arg0: i32) -> (i32, i32) {
    %c0_i32 = arith.constant 0 : i32
    %c0_i32_0 = arith.constant 0 : i32
    %c0_i32_1 = arith.constant 0 : i32
    return %c0_i32, %c0_i32_0 : i32, i32
  }
  func.func @transform_2(%arg0: i32) -> (i32, i32, i32) {
    %c0_i32 = arith.constant 0 : i32
    %c0_i32_0 = arith.constant 0 : i32
    %c0_i32_1 = arith.constant 0 : i32
    %c0_i32_2 = arith.constant 0 : i32
    return %c0_i32, %c0_i32_0, %c0_i32_1 : i32, i32, i32
  }
}

</mosaic_0001>

<bundles_post_ra>
// kernel: tpu_custom_call.1
= control target key start
LH: loop header
LB: loop body
LE: loop exit
PB: predicated region body
PF: predicated region fallthrough
CT: control target
= control target key end

     0   :  { %7 = vsyncpa [#allocation3], 0  ;;  %s633_s0 = inlined_call_operand.hbm [shape: f32[2,32,256], index: 0, kind: input, shape index: {}, may-alias: {0,2}]   ;;  %s634_s1 = inlined_call_operand.vmem [shape: f32[32,56], index: 1, kind: input, shape index: {}]   ;;  %s635_s2 = inlined_call_operand.hbm [shape: f32[2,32,256], index: 2, kind: output, shape index: {}, may-alias: {0,2}]  }
   0x1   :  { %8 = vsyncpa [#allocation4], 0  ;;  %s468_s9 = smov [#allocation2]   ;;  %s420_s13 = scalar_lea.hbm %s633_s0, 2048 }
   0x2   :  { %s14_s10 = sshll.u32 %s468_s9, 4  ;;  %p421_p0 = scmp.ne.s32.totalorder %s633_s0, %s420_s13  ;;  %s15_s10 = int_to_ptr.vmem [resolvable:$true] %s14_s10 }
   0x3   :  { %p424_p1 = scmp.lt.u32.totalorder %s420_s13, %s633_s0 }
   0x5   :  { %p426_p2 = pnand %p424_p1, %p421_p0 }
   0x7   :  { %429 = shalt.err (!%p426_p2)
}
   0x8   :  { %s430_s18 = scalar_lea.vmem %s15_s10, 2048  ;;  %p435_p4 = scmp.lt.s32.totalorder %s15_s10, %s15_s10 }
   0x9   :  { %p431_p3 = scmp.ne.s32.totalorder %s15_s10, %s430_s18  ;;  %p436_p5 = scmp.lt.s32.totalorder %s430_s18, %s430_s18 }
   0xb   :  { %p437_p6 = por %p436_p5, %p435_p4 }
   0xd   :  { %p438_p7 = pnand %p437_p6, %p431_p3 }
   0xf   :  { %441 = shalt.err (!%p438_p7)
}
  0x10   :  { %s469_s19 = smov 256   ;;  %s470_s20 = smov 16  }
  0x11   :  { %20 = dma.hbm_to_vmem [thread:$0]  %s633_s0, 2048, %s15_s10, [#allocation3], %s469_s19, %s469_s19, %s470_s20  }
  0x12   :  { %464 = dma.done.wait [#allocation3], 2048  }
  0x13   :  { %465 = vsyncadd [#allocation3], 4294965248  ;;  %v506_v0 = vld [vmem:[#allocation2 + $0x40] sm:$0xff]  ;;  %v508_v1 = vld [vmem:[#allocation2 + $0x48] sm:$0xff]  ;;  %v105_v24 = vlaneseq  ;;  %s471_s24 = smov 112   ;;  %vm78_vm0 = vcmask 64512  }
  0x14   :  { %v510_v2 = vld [vmem:[#allocation2] sm:$0xff]  ;;  %v58_v3 = vmax.f32 %v506_v0, %v508_v1  ;;  %v514_v4 = vld [vmem:[#allocation2 + $0x8] sm:$0xff]  ;;  %v516_v5 = vld [vmem:[#allocation2 + $0x50] sm:$0xff]  ;;  %s473_s3 = smov 120   ;;  %s475_s4 = smov [#allocation5]  }
  0x15   :  { %v518_v6 = vld [vmem:[#allocation2 + $0x58] sm:$0xff]  ;;  %v46_v7 = vmax.f32 %v510_v2, %v514_v4  ;;  %v522_v8 = vld [vmem:[#allocation2 + $0x10] sm:$0xff]  ;;  %v530_v12 = vld [vmem:[#allocation2 + $0x60] sm:$0xff]  ;;  %v106_v25 = vshrl.u32 %v105_v24, 7  ;;  %s358_s5 = sshll.u32 %s475_s4, 4  ;;  %s359_s5 = int_to_ptr.vmem [resolvable:$true] %s358_s5 }
  0x16   :  { %v524_v9 = vld [vmem:[#allocation2 + $0x18] sm:$0xff]  ;;  %59 = vmax.xlane.f32.xlu1 %v58_v3  ;;  %v61_v10 = vmax.f32 %v516_v5, %v518_v6  ;;  %v532_v13 = vld [vmem:[#allocation2 + $0x68] sm:$0xff]  ;;  %v534_v14 = vld [vmem:[#allocation2 + $0x20] sm:$0xff]  ;;  %s442_s6 = scalar_lea.vmem %s359_s5, 2048  ;;  %p447_p9 = scmp.lt.s32.totalorder %s359_s5, %s359_s5 }
  0x17   :  { %47 = vmax.xlane.f32.xlu0 %v46_v7  ;;  %v49_v11 = vmax.f32 %v522_v8, %v524_v9  ;;  %v536_v15 = vld [vmem:[#allocation2 + $0x28] sm:$0xff]  ;;  %v64_v16 = vmax.f32 %v530_v12, %v532_v13  ;;  %v542_v18 = vld [vmem:[#allocation2 + $0x70] sm:$0xff]  ;;  %v544_v19 = vld [vmem:[#allocation2 + $0x78] sm:$0xff]  ;;  %v107_v26 = vsub.s32 0, %v106_v25  ;;  %p443_p8 = scmp.ne.s32.totalorder %s359_s5, %s442_s6  ;;  %p448_p10 = scmp.lt.s32.totalorder %s442_s6, %s442_s6 }
  0x18   :  { %v52_v17 = vmax.f32 %v534_v14, %v536_v15  ;;  %v546_v20 = vld [vmem:[#allocation2 + $0x30] sm:$0xff]  ;;  %v548_v21 = vld [vmem:[#allocation2 + $0x38] sm:$0xff]  ;;  %v67_v22 = vmax.f32 %v542_v18, %v544_v19  ;;  %v557_v27 = vld [vmem:[%s634_s1] sm:$0xff] }
  0x19   :  { %v55_v23 = vmax.f32 %v546_v20, %v548_v21  ;;  %v560_v28 = vrot.slane %v557_v27, %v107_v26  ;;  %v567_v32 = vld [vmem:[%s634_s1 + $0x8] sm:$0xff]  ;;  %v44_v39 = vld [vmem:[%s634_s1 + $0x10] sm:$0xff]  ;;  %v45_v47 = vld [vmem:[%s634_s1 + $0x18] sm:$0xff]  ;;  %s472_s1 = smov 8   ;;  %p449_p11 = por %p448_p10, %p447_p9 }
  0x1a   :  { %62 = vmax.xlane.f32.xlu1 %v61_v10 }
  0x1b   :  { %50 = vmax.xlane.f32.xlu0 %v49_v11  ;;  %p450_p12 = pnand %p449_p11, %p443_p8 }
  0x1e   :  { %65 = vmax.xlane.f32.xlu1 %v64_v16 }
  0x1f   :  { %53 = vmax.xlane.f32.xlu0 %v52_v17 }
  0x22   :  { %68 = vmax.xlane.f32.xlu1 %v67_v22 }
  0x23   :  { %56 = vmax.xlane.f32.xlu0 %v55_v23 }
  0x39   :  { %110 = vrot.lane.b32.xlu0 %v560_v28, %s471_s24 }
  0xa3   :  { %v60_v29 = vpop.xlane.xlu1 %59 }
  0xa4   :  { %v74_v30 = vmul.f32 %v60_v29, %v557_v27  ;;  %v48_v31 = vpop.xlane.xlu0 %47 }
  0xa5   :  { %v70_v40 = vmul.f32 %v48_v31, %v557_v27 }
  0xa6   :  { %v92_v34 = vsel %vm78_vm0, %v74_v30, 0.0 }
  0xa7   :  { %v63_v33 = vpop.xlane.xlu1 %62  ;;  %v79_v49 = vsel %vm78_vm0, %v70_v40, 0.0 }
  0xa8   :  { %v75_v35 = vmul.f32 %v63_v33, %v567_v32  ;;  %v51_v36 = vpop.xlane.xlu0 %50 }
  0xa9   :  { %v71_v37 = vmul.f32 %v51_v36, %v567_v32 }
  0xaa   :  { %v93_v38 = vsel %vm78_vm0, %v75_v35, 0.0 }
  0xab   :  { %v94_v41 = vadd.f32 %v93_v38, %v92_v34  ;;  %v66_v42 = vpop.xlane.xlu1 %65  ;;  %v80_v45 = vsel %vm78_vm0, %v71_v37, 0.0 }
  0xac   :  { %v76_v43 = vmul.f32 %v66_v42, %v44_v39  ;;  %v54_v44 = vpop.xlane.xlu0 %53  ;;  %v81_v53 = vadd.f32 %v80_v45, %v79_v49 }
  0xad   :  { %v72_v46 = vmul.f32 %v54_v44, %v44_v39 }
  0xae   :  { %v95_v48 = vsel %vm78_vm0, %v76_v43, 0.0 }
  0xaf   :  { %v96_v50 = vadd.f32 %v95_v48, %v94_v41  ;;  %v82_v51 = vsel %vm78_vm0, %v72_v46, 0.0  ;;  %v69_v52 = vpop.xlane.xlu1 %68 }
  0xb0   :  { %v77_v54 = vmul.f32 %v69_v52, %v45_v47  ;;  %v57_v55 = vpop.xlane.xlu0 %56  ;;  %v83_v57 = vadd.f32 %v82_v51, %v81_v53 }
  0xb1   :  { %v73_v56 = vmul.f32 %v57_v55, %v45_v47 }
  0xb2   :  { %v97_v58 = vsel %vm78_vm0, %v77_v54, 0.0 }
  0xb3   :  { %v98_v59 = vadd.f32 %v97_v58, %v96_v50  ;;  %v84_v60 = vsel %vm78_vm0, %v73_v56, 0.0 }
  0xb4   :  { %v85_v61 = vadd.f32 %v84_v60, %v83_v57  ;;  %v111_v25 = vpop.permute.xlu0 %110  ;;  %v474_v60 = vmov 0  }
  0xb5   :  { %v99_v62 = vrot.slane %v98_v59, 4  ;;  %386 = vset.pattern.permute.xlu1 %v474_v60  ;;  %387 = vset.pattern.permute.xlu0 %v474_v60 }
  0xb6   :  { %v86_v63 = vrot.slane %v85_v61, 4 }
  0xb7   :  { %v100_v3 = vadd.f32 %v99_v62, %v98_v59 }
  0xb8   :  { %v87_v7 = vadd.f32 %v86_v63, %v85_v61 }
  0xb9   :  { %v101_v10 = vrot.slane %v100_v3, 2 }
  0xba   :  { %v88_v11 = vrot.slane %v87_v7, 2 }
  0xbb   :  { %v102_v16 = vadd.f32 %v101_v10, %v100_v3 }
  0xbc   :  { %v89_v17 = vadd.f32 %v88_v11, %v87_v7 }
  0xbd   :  { %v103_v22 = vrot.slane %v102_v16, 1 }
  0xbe   :  { %v90_v23 = vrot.slane %v89_v17, 1 }
  0xbf   :  { %v104_v24 = vadd.f32 %v103_v22, %v102_v16 }
  0xc0   :  { %v91_v29 = vadd.f32 %v90_v23, %v89_v17 }
  0xc1   :  { %v114_v31 = vadd.f32 %v111_v25, %v104_v24 }
  0xc2   :  { %v113_v30 = vadd.f32 %v111_v25, %v91_v29 }
  0xc3   :  { %v116_v34 = vmax.f32 %v114_v31, 0.0 }
  0xc4   :  { %v115_v33 = vmax.f32 %v113_v30, 0.0 }
  0xc5   :  { %v124_v36 = vrot.slane %v116_v34, %v107_v26 }
  0xc6   :  { %v120_v35 = vrot.slane %v115_v33, %v107_v26 }
  0xc8   :  { %127 = vrot.lane.b32.xlu1 %v120_v35, %s472_s1 }
  0xcc   :  { %129 = vrot.lane.b32.xlu1 %v124_v36, %s472_s1 }
 0x13a   :  { %v128_v37 = vpop.permute.xlu1 %127 }
 0x13b   :  { %v134_v38 = vmul.f32 %v128_v37, %v567_v32  ;;  %v133_v40 = vmul.f32 %v128_v37, %v557_v27  ;;  %v136_v41 = vmul.f32 %v128_v37, %v45_v47  ;;  %v135_v42 = vmul.f32 %v128_v37, %v44_v39 }
 0x13d   :  { %151 = vrot.lane.b32.xlu0 %v134_v38, %s473_s3  ;;  %149 = vrot.lane.b32.xlu1 %v133_v40, %s473_s3 }
 0x13e   :  { %v130_v43 = vpop.permute.xlu1 %129 }
 0x13f   :  { %v138_v44 = vmul.f32 %v130_v43, %v567_v32  ;;  %v137_v45 = vmul.f32 %v130_v43, %v557_v27  ;;  %v140_v26 = vmul.f32 %v130_v43, %v45_v47  ;;  %v139_v46 = vmul.f32 %v130_v43, %v44_v39 }
 0x141   :  { %155 = vrot.lane.b32.xlu0 %v136_v41, %s473_s3  ;;  %153 = vrot.lane.b32.xlu1 %v135_v42, %s473_s3 }
 0x145   :  { %159 = vrot.lane.b32.xlu0 %v138_v44, %s473_s3  ;;  %157 = vrot.lane.b32.xlu1 %v137_v45, %s473_s3 }
 0x149   :  { %163 = vrot.lane.b32.xlu0 %v140_v26, %s473_s3  ;;  %161 = vrot.lane.b32.xlu1 %v139_v46, %s473_s3 }
 0x14d   :  { %199 = vbcast.lane.b32.xlu1 %v560_v28, 280 }
 0x1af   :  { %v152_v48 = vpop.permute.xlu0 %151  ;;  %v150_v49 = vpop.permute.xlu1 %149 }
 0x1b0   :  { %v176_v50 = vsel %vm78_vm0, %v152_v48, 0.0  ;;  %v173_v51 = vsel %vm78_vm0, %v150_v49, 0.0 }
 0x1b1   :  { %177 = vadd.xlane.f32.xlu0 %v176_v50  ;;  %174 = vadd.xlane.f32.xlu1 %v173_v51 }
 0x1b3   :  { %v156_v52 = vpop.permute.xlu0 %155  ;;  %v154_v32 = vpop.permute.xlu1 %153 }
 0x1b4   :  { %v179_v27 = vsel %vm78_vm0, %v154_v32, 0.0  ;;  %v182_v39 = vsel %vm78_vm0, %v156_v52, 0.0 }
 0x1b5   :  { %180 = vadd.xlane.f32.xlu0 %v179_v27 }
 0x1b7   :  { %v160_v53 = vpop.permute.xlu0 %159  ;;  %v158_v47 = vpop.permute.xlu1 %157 }
 0x1b8   :  { %v185_v54 = vsel %vm78_vm0, %v158_v47, 0.0  ;;  %v188_v56 = vsel %vm78_vm0, %v160_v53, 0.0 }
 0x1b9   :  { %183 = vadd.xlane.f32.xlu0 %v182_v39  ;;  %186 = vadd.xlane.f32.xlu1 %v185_v54 }
 0x1bb   :  { %v162_v55 = vpop.permute.xlu1 %161  ;;  %v164_v58 = vpop.permute.xlu0 %163 }
 0x1bc   :  { %v191_v57 = vsel %vm78_vm0, %v162_v55, 0.0  ;;  %v194_v59 = vsel %vm78_vm0, %v164_v58, 0.0 }
 0x1bd   :  { %189 = vadd.xlane.f32.xlu0 %v188_v56  ;;  %192 = vadd.xlane.f32.xlu1 %v191_v57 }
 0x1bf   :  { %v200_v61 = vpop.permute.xlu1 %199 }
 0x1c1   :  { %195 = vadd.xlane.f32.xlu0 %v194_v59 }
 0x1ce   :  { %207 = vbcast.lane.b32.xlu1 %v560_v28, 296 }
 0x1d2   :  { %211 = vbcast.lane.b32.xlu1 %v560_v28, 304 }
 0x1d7   :  { %203 = vbcast.lane.b32.xlu0 %v560_v28, 288 }
 0x23e   :  { %v178_v62 = vpop.xlane.xlu0 %177  ;;  %v175_v63 = vpop.xlane.xlu1 %174 }
 0x23f   :  { %v217_v3 = vadd.f32 %v200_v61, %v175_v63 }
 0x241   :  { %v370_v7 = vmul.f32 -1.442695, %v217_v3 }
 0x242   :  { %v181_v10 = vpop.xlane.xlu0 %180 }
 0x243   :  { %388 = vpow2.f32 %v370_v7 }
 0x246   :  { %v184_v11 = vpop.xlane.xlu0 %183  ;;  %v187_v16 = vpop.xlane.xlu1 %186 }
 0x247   :  { %v221_v24 = vadd.f32 %v200_v61, %v187_v16 }
 0x249   :  { %v374_v33 = vmul.f32 -1.442695, %v221_v24 }
 0x24a   :  { %v190_v17 = vpop.xlane.xlu0 %189  ;;  %v193_v22 = vpop.xlane.xlu1 %192 }
 0x24d   :  { %v389_v23 = vpop.eup %388 }
 0x24e   :  { %v249_v25 = vadd.f32 1.0, %v389_v23  ;;  %v196_v29 = vpop.xlane.xlu0 %195  ;;  %v208_v30 = vpop.permute.xlu1 %207 }
 0x24f   :  { %v219_v28 = vadd.f32 %v208_v30, %v181_v10  ;;  %v223_v31 = vadd.f32 %v208_v30, %v193_v22 }
 0x250   :  { %390 = vrcp.f32 %v249_v25 }
 0x251   :  { %v372_v34 = vmul.f32 -1.442695, %v219_v28  ;;  %v376_v41 = vmul.f32 -1.442695, %v223_v31 }
 0x252   :  { %v204_v35 = vpop.permute.xlu0 %203  ;;  %v212_v36 = vpop.permute.xlu1 %211 }
 0x253   :  { %392 = vpow2.f32 %v372_v34  ;;  %v218_v37 = vadd.f32 %v204_v35, %v178_v62  ;;  %v222_v38 = vadd.f32 %v204_v35, %v190_v17  ;;  %v220_v40 = vadd.f32 %v212_v36, %v184_v11 }
 0x254   :  { %v224_v42 = vadd.f32 %v212_v36, %v196_v29  ;;  %394 = vpow2.f32 %v374_v33 }
 0x255   :  { %v371_v43 = vmul.f32 -1.442695, %v218_v37  ;;  %v375_v44 = vmul.f32 -1.442695, %v222_v38  ;;  %v373_v45 = vmul.f32 -1.442695, %v220_v40 }
 0x256   :  { %v377_v26 = vmul.f32 -1.442695, %v224_v42 }
 0x257   :  { %396 = vpow2.f32 %v371_v43 }
 0x258   :  { %398 = vpow2.f32 %v376_v41 }
 0x259   :  { %400 = vpow2.f32 %v375_v44 }
 0x25a   :  { %v391_v46 = vpop.eup %390  ;;  %402 = vpow2.f32 %v373_v45 }
 0x25b   :  { %v273_v48 = vadd.f32 1.0, %v391_v46  ;;  %404 = vpow2.f32 %v377_v26 }
 0x25d   :  { %v393_v49 = vpop.eup %392  ;;  %283 = vperm.xlu1 %386, %v273_v48  }
 0x25e   :  { %v251_v50 = vadd.f32 1.0, %v393_v49  ;;  %v395_v51 = vpop.eup %394 }
 0x25f   :  { %v253_v27 = vadd.f32 1.0, %v395_v51 }
 0x260   :  { %406 = vrcp.f32 %v251_v50 }
 0x261   :  { %v397_v52 = vpop.eup %396 }
 0x262   :  { %v399_v32 = vpop.eup %398  ;;  %v250_v53 = vadd.f32 1.0, %v397_v52 }
 0x263   :  { %v401_v47 = vpop.eup %400  ;;  %v255_v57 = vadd.f32 1.0, %v399_v32 }
 0x264   :  { %v403_v39 = vpop.eup %402  ;;  %408 = vrcp.f32 %v250_v53  ;;  %v254_v54 = vadd.f32 1.0, %v401_v47 }
 0x265   :  { %v252_v55 = vadd.f32 1.0, %v403_v39  ;;  %v405_v56 = vpop.eup %404  ;;  %410 = vrcp.f32 %v253_v27 }
 0x266   :  { %v256_v58 = vadd.f32 1.0, %v405_v56 }
 0x267   :  { %412 = vrcp.f32 %v252_v55 }
 0x268   :  { %414 = vrcp.f32 %v254_v54 }
 0x269   :  { %416 = vrcp.f32 %v255_v57 }
 0x26a   :  { %v407_v59 = vpop.eup %406  ;;  %418 = vrcp.f32 %v256_v58 }
 0x26b   :  { %v275_v60 = vadd.f32 1.0, %v407_v59 }
 0x26d   :  { %293 = vperm.xlu1 %386, %v275_v60  }
 0x26e   :  { %v409_v61 = vpop.eup %408 }
 0x26f   :  { %v274_v62 = vadd.f32 1.0, %v409_v61  ;;  %v411_v63 = vpop.eup %410 }
 0x270   :  { %v277_v11 = vadd.f32 1.0, %v411_v63 }
 0x271   :  { %v413_v3 = vpop.eup %412  ;;  %288 = vperm.xlu0 %387, %v274_v62  }
 0x272   :  { %v276_v7 = vadd.f32 1.0, %v413_v3  ;;  %v415_v10 = vpop.eup %414 }
 0x273   :  { %v417_v16 = vpop.eup %416  ;;  %v278_v17 = vadd.f32 1.0, %v415_v10 }
 0x274   :  { %298 = vperm.xlu1 %386, %v276_v7   ;;  %v419_v22 = vpop.eup %418  ;;  %v279_v23 = vadd.f32 1.0, %v417_v16 }
 0x275   :  { %303 = vperm.xlu0 %387, %v277_v11   ;;  %v280_v24 = vadd.f32 1.0, %v419_v22 }
 0x278   :  { %308 = vperm.xlu1 %386, %v278_v17  }
 0x279   :  { %313 = vperm.xlu0 %387, %v279_v23  }
 0x27c   :  { %318 = vperm.xlu1 %386, %v280_v24  }
 0x2dc   :  { %v284_v25 = vpop.permute.xlu1 %283 }
 0x2dd   :  { %v321_v29 = vmul.f32 %v284_v25, %v510_v2  ;;  %v322_v30 = vmul.f32 %v284_v25, %v514_v4 }
 0x2df   :  { %337 = vst [vmem:[#allocation5] sm:$0xff] %v321_v29  ;;  %338 = vst [vmem:[#allocation5 + $0x8] sm:$0xff] %v322_v30 }
 0x2ec   :  { %v294_v28 = vpop.permute.xlu1 %293 }
 0x2ed   :  { %v325_v31 = vmul.f32 %v294_v28, %v534_v14  ;;  %v326_v33 = vmul.f32 %v294_v28, %v536_v15 }
 0x2ef   :  { %341 = vst [vmem:[#allocation5 + $0x20] sm:$0xff] %v325_v31  ;;  %342 = vst [vmem:[#allocation5 + $0x28] sm:$0xff] %v326_v33 }
 0x2f0   :  { %v289_v34 = vpop.permute.xlu0 %288 }
 0x2f1   :  { %v323_v35 = vmul.f32 %v289_v34, %v522_v8  ;;  %v324_v36 = vmul.f32 %v289_v34, %v524_v9 }
 0x2f3   :  { %339 = vst [vmem:[#allocation5 + $0x10] sm:$0xff] %v323_v35  ;;  %340 = vst [vmem:[#allocation5 + $0x18] sm:$0xff] %v324_v36  ;;  %v299_v37 = vpop.permute.xlu1 %298 }
 0x2f4   :  { %v327_v2 = vmul.f32 %v299_v37, %v546_v20  ;;  %v328_v4 = vmul.f32 %v299_v37, %v548_v21  ;;  %v304_v38 = vpop.permute.xlu0 %303 }
 0x2f5   :  { %v329_v40 = vmul.f32 %v304_v38, %v506_v0  ;;  %v330_v14 = vmul.f32 %v304_v38, %v508_v1 }
 0x2f6   :  { %343 = vst [vmem:[#allocation5 + $0x30] sm:$0xff] %v327_v2  ;;  %344 = vst [vmem:[#allocation5 + $0x38] sm:$0xff] %v328_v4 }
 0x2f7   :  { %345 = vst [vmem:[#allocation5 + $0x40] sm:$0xff] %v329_v40  ;;  %346 = vst [vmem:[#allocation5 + $0x48] sm:$0xff] %v330_v14  ;;  %v309_v15 = vpop.permute.xlu1 %308 }
 0x2f8   :  { %v331_v8 = vmul.f32 %v309_v15, %v516_v5  ;;  %v332_v9 = vmul.f32 %v309_v15, %v518_v6  ;;  %v314_v41 = vpop.permute.xlu0 %313 }
 0x2f9   :  { %v333_v42 = vmul.f32 %v314_v41, %v530_v12  ;;  %v334_v20 = vmul.f32 %v314_v41, %v532_v13 }
 0x2fa   :  { %347 = vst [vmem:[#allocation5 + $0x50] sm:$0xff] %v331_v8  ;;  %348 = vst [vmem:[#allocation5 + $0x58] sm:$0xff] %v332_v9 }
 0x2fb   :  { %349 = vst [vmem:[#allocation5 + $0x60] sm:$0xff] %v333_v42  ;;  %350 = vst [vmem:[#allocation5 + $0x68] sm:$0xff] %v334_v20  ;;  %v319_v0 = vpop.permute.xlu1 %318 }
 0x2fc   :  { %v335_v1 = vmul.f32 %v319_v0, %v542_v18  ;;  %v336_v21 = vmul.f32 %v319_v0, %v544_v19 }
 0x2fe   :  { %351 = vst [vmem:[#allocation5 + $0x70] sm:$0xff] %v335_v1  ;;  %352 = vst [vmem:[#allocation5 + $0x78] sm:$0xff] %v336_v21 }
 0x2ff   :  { %453 = shalt.err (!%p450_p12)
}
 0x300   :  { %s454_s9 = scalar_lea.hbm %s635_s2, 2048 }
 0x301   :  { %p455_p13 = scmp.ne.s32.totalorder %s635_s2, %s454_s9  ;;  %p458_p0 = scmp.lt.u32.totalorder %s454_s9, %s635_s2 }
 0x303   :  { %p460_p1 = pnand %p458_p0, %p455_p13 }
 0x305   :  { %463 = shalt.err (!%p460_p1)
}
 0x306   :  { %364 = dma.vmem_to_hbm [thread:$0]  %s359_s5, 2048, %s635_s2, [#allocation4], %s469_s19, %s469_s19, %s470_s20  }
 0x307   :  { %466 = dma.done.wait [#allocation4], 2048  }
 0x308   :  { %467 = vsyncadd [#allocation4], 4294965248 }
 0x309   :  { %368 = vsyncpa [#allocation3], 1 }
 0x30a   :  { %369 = vsyncpa [#allocation4], 1 }

</bundles_post_ra>
